<compile_context>
chip_gen: v5e
topology: v5e:2x2
jax: 0.10.0
libtpu: 0.0.40
codegen_flags: <defaults>
</compile_context>

<pallas_src>
import math

import jax
import jax.numpy as jnp
from jax.experimental import pallas as pl
from jax.experimental.pallas import tpu as pltpu


# ----------------------------- Phase 0 kernel --------------------------------
# support1 = x @ W_gc1   (bias + relu happen after the adj matmul in phase 1)
def gc1_support_kernel(x_ref, w1_ref, s1_ref):
    f32 = jnp.float32
    s1 = jnp.dot(x_ref[...].astype(f32), w1_ref[...], preferred_element_type=f32)
    s1_ref[...] = s1.astype(s1_ref.dtype)


# ----------------------------- Phase 1 kernel --------------------------------
# Per adj row panel:
#   h1       = relu(adj_panel @ support1 + b_gc1)
#   support2 = h1 @ W_fused + b_fused     (attention + gc2-projection, fused)
def gc1_attn_kernel(adj_ref, s1_ref, b1_ref, wf_ref, bf_ref, s2_ref):
    f32 = jnp.float32
    h1 = jnp.dot(adj_ref[...], s1_ref[...], preferred_element_type=f32) + b1_ref[...]
    h1 = jnp.maximum(h1, 0.0)
    s2 = jnp.dot(h1, wf_ref[...], preferred_element_type=f32) + bf_ref[...]
    s2_ref[...] = s2.astype(s2_ref.dtype)


# ----------------------------- Phase 2 kernel --------------------------------
# Per adj row panel:
#   z   = adj_panel @ support2 + b_gc2
#   out = MLP(z)   (last layer lane-padded to 128; slice [:, :2] outside)
def gc2_mlp_kernel(adj_ref, s2_ref, b2_ref,
                   m1w_ref, m1b_ref, m2w_ref, m2b_ref, m3w_ref, m3b_ref,
                   out_ref):
    f32 = jnp.float32
    z = jnp.dot(adj_ref[...], s2_ref[...], preferred_element_type=f32) + b2_ref[...]
    z = jnp.maximum(jnp.dot(z, m1w_ref[...], preferred_element_type=f32) + m1b_ref[...], 0.0)
    z = jnp.maximum(jnp.dot(z, m2w_ref[...], preferred_element_type=f32) + m2b_ref[...], 0.0)
    z = jnp.dot(z, m3w_ref[...], preferred_element_type=f32) + m3b_ref[...]
    out_ref[...] = z.astype(out_ref.dtype)


# ------------------------------ wrapper ---------------------------------------

def _pick_row_tile(n_rows, panel_row_bytes):
    """Row-panel height for streaming adj: big enough to amortize per-step
    overhead, small enough that the double-buffered (tm, N) bf16 panel stays
    well inside scoped VMEM on every generation (v7x: 64 MiB physical)."""
    budget = 16 * 1024 * 1024  # per adj panel buffer
    tm = min(512, max(8, budget // max(panel_row_bytes, 1)))
    tm -= tm % 8
    tm = max(tm, 8)
    return n_rows if n_rows <= tm else tm


def camv_gat_forward(x, adj, params, *, block_rows=None):
    """x: (N, nfeat) f32, adj: (N, N) f32, params: dict of weights."""
    n, nfeat = x.shape
    nhid = params["w_gc1"].shape[1]
    out_dim = params["w_gc2"].shape[1]  # 96 (MLP starts with Linear(96, 64))

    f32, bf16 = jnp.float32, jnp.bfloat16

    # --- parameter prep (tiny, done once in XLA) ---
    w_fused = (params["w_k"] @ params["w_proj"]) @ params["w_gc2"]            # (nhid, 96)
    b_fused = (params["b_k"] @ params["w_proj"] + params["b_proj"]) @ params["w_gc2"]  # (1, 96)

    # Pad the 16->2 layer to 128 output lanes -> lane-dense (unmasked) stores.
    m3w_pad = jnp.zeros((params["m3_w"].shape[0], 128), f32).at[:, :2].set(params["m3_w"])
    m3b_pad = jnp.zeros((1, 128), f32).at[:, :2].set(params["m3_b"])

    # adj is the only O(N^2) operand: stream it in bf16 (f32 accumulation).
    adj_bf16 = adj.astype(bf16)

    if block_rows is None:
        block_rows = _pick_row_tile(n, 2 * n)
    tm = min(block_rows, n)
    grid = (pl.cdiv(n, tm),)

    cparams = pltpu.CompilerParams(
        dimension_semantics=("parallel",),          # shard row panels across TCs (v7x)
        vmem_limit_bytes=48 * 1024 * 1024,          # above default scoped limit, < physical everywhere
    )

    def res_spec(shape):  # fetched once, VMEM-resident across the whole grid
        return pl.BlockSpec(shape, lambda i: (0, 0))

    # ---- phase 0: support1 = x @ W_gc1 --------------------------------------
    s1 = pl.pallas_call(
        gc1_support_kernel,
        out_shape=jax.ShapeDtypeStruct((n, nhid), bf16),
        grid=grid,
        in_specs=[pl.BlockSpec((tm, nfeat), lambda i: (i, 0)),
                  res_spec((nfeat, nhid))],
        out_specs=pl.BlockSpec((tm, nhid), lambda i: (i, 0)),
        compiler_params=cparams,
        cost_estimate=pl.CostEstimate(
            flops=2 * n * nfeat * nhid, transcendentals=0,
            bytes_accessed=4 * n * nfeat + 4 * nfeat * nhid + 2 * n * nhid),
    )(x.astype(f32), params["w_gc1"])

    # ---- phase 1: support2 = relu(adj @ support1 + b_gc1) @ W_fused + b_fused
    s2 = pl.pallas_call(
        gc1_attn_kernel,
        out_shape=jax.ShapeDtypeStruct((n, out_dim), bf16),
        grid=grid,
        in_specs=[pl.BlockSpec((tm, n), lambda i: (i, 0)),   # adj row panel (streamed)
                  res_spec((n, nhid)),                        # support1 (resident)
                  res_spec((1, nhid)),                        # b_gc1
                  res_spec((nhid, out_dim)),                  # W_fused
                  res_spec((1, out_dim))],                    # b_fused
        out_specs=pl.BlockSpec((tm, out_dim), lambda i: (i, 0)),
        compiler_params=cparams,
        cost_estimate=pl.CostEstimate(
            flops=2 * n * n * nhid + 2 * n * nhid * out_dim, transcendentals=0,
            bytes_accessed=2 * n * n + 2 * n * nhid + 2 * n * out_dim),
    )(adj_bf16, s1, params["b_gc1"], w_fused, b_fused)

    # ---- phase 2: z = adj @ support2 + b_gc2; out = MLP(z) -------------------
    out_pad = pl.pallas_call(
        gc2_mlp_kernel,
        out_shape=jax.ShapeDtypeStruct((n, 128), f32),
        grid=grid,
        in_specs=[pl.BlockSpec((tm, n), lambda i: (i, 0)),   # adj row panel (streamed)
                  res_spec((n, out_dim)),                     # support2 (resident)
                  res_spec((1, out_dim)),                     # b_gc2
                  res_spec((out_dim, 64)), res_spec((1, 64)),
                  res_spec((64, 16)), res_spec((1, 16)),
                  res_spec((16, 128)), res_spec((1, 128))],
        out_specs=pl.BlockSpec((tm, 128), lambda i: (i, 0)),
        compiler_params=cparams,
        cost_estimate=pl.CostEstimate(
            flops=2 * n * n * out_dim + 2 * n * (out_dim * 64 + 64 * 16 + 16 * 128),
            transcendentals=0,
            bytes_accessed=2 * n * n + 2 * n * out_dim + 4 * n * 128),
    )(adj_bf16, s2, params["b_gc2"],
      params["m1_w"], params["m1_b"], params["m2_w"], params["m2_b"],
      m3w_pad, m3b_pad)

    return out_pad[:, :2]


# --------------------------- reference (pure JAX) -----------------------------
# Precision-matched to the kernel (adj / support tensors in bf16, f32 accum).

def camv_gat_reference(x, adj, p):
    f32, bf16 = jnp.float32, jnp.bfloat16
    adjb = adj.astype(bf16)
    w_fused = (p["w_k"] @ p["w_proj"]) @ p["w_gc2"]
    b_fused = (p["b_k"] @ p["w_proj"] + p["b_proj"]) @ p["w_gc2"]
    s1 = jnp.dot(x, p["w_gc1"], preferred_element_type=f32).astype(bf16)
    h1 = jnp.maximum(jnp.dot(adjb, s1, preferred_element_type=f32) + p["b_gc1"], 0.0)
    s2 = (jnp.dot(h1, w_fused, preferred_element_type=f32) + b_fused).astype(bf16)
    z = jnp.dot(adjb, s2, preferred_element_type=f32) + p["b_gc2"]
    z = jnp.maximum(z @ p["m1_w"] + p["m1_b"], 0.0)
    z = jnp.maximum(z @ p["m2_w"] + p["m2_b"], 0.0)
    return z @ p["m3_w"] + p["m3_b"]


# ------------------------------ parameter init --------------------------------

def init_params(key, nfeat, nhid, out):
    def lin(k, fan_in, fan_out):
        kw, kb = jax.random.split(k)
        s = 1.0 / math.sqrt(fan_in)
        w = jax.random.uniform(kw, (fan_in, fan_out), jnp.float32, -s, s)
        b = jax.random.uniform(kb, (1, fan_out), jnp.float32, -s, s)
        return w, b

    keys = jax.random.split(key, 8)
    p = {}
    p["w_gc1"], p["b_gc1"] = lin(keys[0], nfeat, nhid)   # GraphConvolution(nfeat, nhid)
    p["w_k"], p["b_k"] = lin(keys[1], nhid, nhid)        # Attention w_k
    p["w_proj"], p["b_proj"] = lin(keys[2], nhid, nhid)  # Attention proj
    p["w_gc2"], p["b_gc2"] = lin(keys[3], nhid, out)     # GraphConvolution(nhid, out)
    p["m1_w"], p["m1_b"] = lin(keys[4], 96, 64)          # Linear(96, 64)
    p["m2_w"], p["m2_b"] = lin(keys[5], 64, 16)          # Linear(64, 16)
    p["m3_w"], p["m3_b"] = lin(keys[6], 16, 2)           # Linear(16, 2)
    return p


if __name__ == "__main__":
    # MLP starts with Linear(96, 64) so the GAT output dim must be 96.
    # N=256 with block_rows=128 exercises a 2-step row-tiled grid.
    N_NODES, NFEAT, NHID, OUT = 256, 16, 32, 96

    key = jax.random.PRNGKey(0)
    kx, kadj, kparam = jax.random.split(key, 3)

    x = jax.random.normal(kx, (N_NODES, NFEAT), jnp.float32)
    adj_raw = jax.random.uniform(kadj, (N_NODES, N_NODES), jnp.float32)
    adj = adj_raw / jnp.sum(adj_raw, axis=-1, keepdims=True)  # row-normalized adjacency

    params = init_params(kparam, NFEAT, NHID, OUT)

    out = camv_gat_forward(x, adj, params, block_rows=128)
    out = jax.block_until_ready(out)

    ref = camv_gat_reference(x, adj, params)
    assert out.shape == (N_NODES, 2)
    max_err = float(jnp.max(jnp.abs(out - ref)))
    assert jnp.allclose(out, ref, atol=2e-2, rtol=2e-2), f"mismatch vs reference (max |err|={max_err})"

    print("KERNEL_OK")
</pallas_src>

<mosaic_0001>
module attributes {stable_mosaic.version = 11 : i64} {
  func.func @gc1_support_kernel(%arg0: i32, %arg1: memref<128x16xf32, #tpu.memory_space<vmem>>, %arg2: memref<16x32xf32, #tpu.memory_space<vmem>>, %arg3: memref<128x32xbf16, #tpu.memory_space<vmem>>) attributes {dimension_semantics = [#tpu.dimension_semantics<parallel>], iteration_bounds = array<i64: 2>, scalar_prefetch = 0 : i64, scratch_operands = 0 : i64, tpu.core_type = #tpu.core_type<tc>, window_params = [{transform_indices = @transform_0, window_bounds = array<i64: 128, 16>}, {pipeline_mode = #tpu.pipeline_mode<synchronous>, transform_indices = @transform_1, window_bounds = array<i64: 16, 32>}, {transform_indices = @transform_2, window_bounds = array<i64: 128, 32>}]} {
    %c0 = arith.constant 0 : index
    %c0_0 = arith.constant 0 : index
    %0 = vector.load %arg1[%c0, %c0_0] : memref<128x16xf32, #tpu.memory_space<vmem>>, vector<128x16xf32>
    %c0_1 = arith.constant 0 : index
    %c0_2 = arith.constant 0 : index
    %1 = vector.load %arg2[%c0_1, %c0_2] : memref<16x32xf32, #tpu.memory_space<vmem>>, vector<16x32xf32>
    %cst = arith.constant dense<0.000000e+00> : vector<128x32xf32>
    %2 = tpu.matmul %0, %1, %cst {dimension_numbers = #tpu.dot_dimension_numbers<[1], [0], [0], [1], [0, 0, 1, 1], [], []>} : vector<128x16xf32>, vector<16x32xf32>, vector<128x32xf32> -> vector<128x32xf32>
    %3 = arith.truncf %2 : vector<128x32xf32> to vector<128x32xbf16>
    %c0_3 = arith.constant 0 : index
    %c0_4 = arith.constant 0 : index
    %4 = vector.load %arg3[%c0_3, %c0_4] : memref<128x32xbf16, #tpu.memory_space<vmem>>, vector<128x32xbf16>
    tpu.vector_store %arg3[%c0_3, %c0_4], %3 {strides = array<i32>} : memref<128x32xbf16, #tpu.memory_space<vmem>>, vector<128x32xbf16>,
    return
  }
  func.func @transform_0(%arg0: i32) -> (i32, i32) {
    %c0_i32 = arith.constant 0 : i32
    %c0_i32_0 = arith.constant 0 : i32
    return %arg0, %c0_i32 : i32, i32
  }
  func.func @transform_1(%arg0: i32) -> (i32, i32) {
    %c0_i32 = arith.constant 0 : i32
    %c0_i32_0 = arith.constant 0 : i32
    %c0_i32_1 = arith.constant 0 : i32
    return %c0_i32, %c0_i32_0 : i32, i32
  }
  func.func @transform_2(%arg0: i32) -> (i32, i32) {
    %c0_i32 = arith.constant 0 : i32
    %c0_i32_0 = arith.constant 0 : i32
    return %arg0, %c0_i32 : i32, i32
  }
}

</mosaic_0001>

<bundles_post_ra>
// kernel: tpu_custom_call.1
= control target key start
LH: loop header
LB: loop body
LE: loop exit
PB: predicated region body
PF: predicated region fallthrough
CT: control target
= control target key end

     0   :  { %s432_s9 = smov 0   ;;  %s509_s0 = inlined_call_operand.vmem [shape: f32[256,16], index: 0, kind: input, shape index: {}]   ;;  %s510_s1 = inlined_call_operand.vmem [shape: f32[16,32], index: 1, kind: input, shape index: {}]   ;;  %s511_s2 = inlined_call_operand.vmem [shape: bf16[256,32], index: 2, kind: output, shape index: {}]  }
   0x1 LB: > { %s368_s10 = sadd.s32 4294967295, %s415_s9   ;;  %p372_p0 = scmp.ge.s32.totalorder %s415_s9, 1  ;;  %s415_s9 = sphi %s432_s9, %s12_s9  }
   0x2   : > { %p113_p1 = scmp.lt.s32.totalorder %s415_s9, 3 }
   0x4   : > { %p114_p2 = pnand %p372_p0, %p113_p1 }
   0x5   : > { %s373_s15 = sshll.u32 (!%p114_p2), %s368_s10, 4 }
   0x6   : > { %117 = sbr.rel (%p114_p2) target bundleno = 176 (0xb0), region = 28  ;;  %p136_p3 = scmp.lt.s32.totalorder (!%p114_p2), %s373_s15, 31 }
   0xb   : > { %v164_v0 = vld [vmem:[%s510_s1 + $0x8] sm:$0xff]  ;;  %v163_v1 = vld [vmem:[%s510_s1] sm:$0xff]  ;;  %s513_s15 = smov (!%p136_p3, %s373_s15), 31  ;;  %vm165_vm0 = vcmask 130048   ;;  %vm295_vm1 = vcmask 257024  }
   0xc   : > { %396 = vmatpush.msra.mxu2 %v164_v0  ;;  %397 = vmatpush.msra.mxu3 %v164_v0  ;;  %s374_s16 = sshll.u32 %s513_s15, 3  ;;  %s376_s20 = sshll.u32 %s513_s15, 2 }
   0xd   : > { %228 = vmatpush.msra.mxu0 %v164_v0  ;;  %395 = vmatpush.msra.mxu1 %v164_v0  ;;  %s139_s19 = scalar_lea.vmem %s509_s0, %s374_s16  ;;  %s472_s23 = scalar_lea.vmem %s511_s2, %s376_s20 }
   0xe   : > { %399 = vmatpush.msra.mxu2 %v163_v1  ;;  %400 = vmatpush.msra.mxu3 %v163_v1  ;;  %v155_v2 = vld [vmem:[%s139_s19 + $0x40] sm:$0xff]  ;;  %v156_v6 = vld [vmem:[%s139_s19 + $0x48] sm:$0xff]  ;;  %v157_v10 = vld [vmem:[%s139_s19 + $0x50] sm:$0xff] }
   0xf   : > { %229 = vmatpush.msra.mxu0 %v163_v1  ;;  %398 = vmatpush.msra.mxu1 %v163_v1  ;;  %v159_v3 = vld [vmem:[%s139_s19 + $0x60] sm:$0xff]  ;;  %v160_v7 = vld [vmem:[%s139_s19 + $0x68] sm:$0xff]  ;;  %v161_v11 = vld [vmem:[%s139_s19 + $0x70] sm:$0xff] }
  0x10   : > { %v147_v4 = vld [vmem:[%s139_s19] sm:$0xff]  ;;  %385 = vmatmul.msk.f32.vlgmr.msra.gmra.mxu2 %vm165_vm0, %v155_v2  ;;  %389 = vmatmul.msk.f32.vlgmr.msra.gmra.mxu3 %vm165_vm0, %v159_v3  ;;  %v148_v8 = vld [vmem:[%s139_s19 + $0x8] sm:$0xff]  ;;  %v149_v12 = vld [vmem:[%s139_s19 + $0x10] sm:$0xff] }
  0x11   : > { %v151_v5 = vld [vmem:[%s139_s19 + $0x20] sm:$0xff]  ;;  %377 = vmatmul.msk.f32.vlgmr.msra.gmra.mxu0 %vm165_vm0, %v147_v4  ;;  %v152_v9 = vld [vmem:[%s139_s19 + $0x28] sm:$0xff]  ;;  %v153_v13 = vld [vmem:[%s139_s19 + $0x30] sm:$0xff] }
  0x12   : > { %381 = vmatmul.msk.f32.vlgmr.msra.gmra.mxu1 %vm165_vm0, %v151_v5  ;;  %v158_v14 = vld [vmem:[%s139_s19 + $0x58] sm:$0xff] }
  0x13   : > { %v162_v15 = vld [vmem:[%s139_s19 + $0x78] sm:$0xff] }
  0x14   : > { %v150_v16 = vld [vmem:[%s139_s19 + $0x18] sm:$0xff] }
  0x15   : > { %v154_v17 = vld [vmem:[%s139_s19 + $0x38] sm:$0xff] }
  0x18   : > { %386 = vmatmul.msk.f32.gmra.mxu2 %vm165_vm0, %v156_v6  ;;  %390 = vmatmul.msk.f32.gmra.mxu3 %vm165_vm0, %v160_v7 }
  0x19   : > { %378 = vmatmul.msk.f32.gmra.mxu0 %vm165_vm0, %v148_v8 }
  0x1a   : > { %382 = vmatmul.msk.f32.gmra.mxu1 %vm165_vm0, %v152_v9 }
  0x20   : > { %387 = vmatmul.msk.f32.gmra.mxu2 %vm165_vm0, %v157_v10  ;;  %391 = vmatmul.msk.f32.gmra.mxu3 %vm165_vm0, %v161_v11 }
  0x21   : > { %379 = vmatmul.msk.f32.gmra.mxu0 %vm165_vm0, %v149_v12 }
  0x22   : > { %383 = vmatmul.msk.f32.gmra.mxu1 %vm165_vm0, %v153_v13 }
  0x28   : > { %388 = vmatmul.msk.f32.gmra.mxu2 %vm165_vm0, %v158_v14  ;;  %392 = vmatmul.msk.f32.gmra.mxu3 %vm165_vm0, %v162_v15 }
  0x29   : > { %380 = vmatmul.msk.f32.gmra.mxu0 %vm165_vm0, %v150_v16 }
  0x2a   : > { %384 = vmatmul.msk.f32.gmra.mxu1 %vm165_vm0, %v154_v17 }
  0x8e   : > { %v231_v18 = vpop.f32.mrf.mxu0 }
  0x8f   : > { %v243_v19 = vpop.f32.mrf.mxu1  ;;  %v279_v20 = vpack.c.bf16 %v231_v18, %v231_v18 }
  0x90   : > { %v283_v21 = vpack.c.bf16 %v243_v19, %v243_v19 }
  0x91   : > { %296 = vst.msk [vmem:[%s472_s23] sm:$0xf] %vm295_vm1, %v279_v20 }
  0x92   : > { %300 = vst.msk [vmem:[%s472_s23 + $0x10] sm:$0xf] %vm295_vm1, %v283_v21 }
  0x93   : > { %v255_v22 = vpop.f32.mrf.mxu2  ;;  %v267_v23 = vpop.f32.mrf.mxu3 }
  0x94   : > { %v287_v24 = vpack.c.bf16 %v255_v22, %v255_v22  ;;  %v291_v25 = vpack.c.bf16 %v267_v23, %v267_v23 }
  0x96   : > { %304 = vst.msk [vmem:[%s472_s23 + $0x20] sm:$0xf] %vm295_vm1, %v287_v24  ;;  %v234_v26 = vpop.f32.mrf.mxu0 }
  0x97   : > { %v246_v27 = vpop.f32.mrf.mxu1  ;;  %308 = vst.msk [vmem:[%s472_s23 + $0x30] sm:$0xf] %vm295_vm1, %v291_v25  ;;  %v280_v28 = vpack.c.bf16 %v234_v26, %v234_v26 }
  0x98   : > { %v284_v29 = vpack.c.bf16 %v246_v27, %v246_v27 }
  0x99   : > { %297 = vst.msk [vmem:[%s472_s23 + $0x4] sm:$0xf] %vm295_vm1, %v280_v28 }
  0x9a   : > { %301 = vst.msk [vmem:[%s472_s23 + $0x14] sm:$0xf] %vm295_vm1, %v284_v29 }
  0x9b   : > { %v258_v30 = vpop.f32.mrf.mxu2  ;;  %v270_v31 = vpop.f32.mrf.mxu3 }
  0x9c   : > { %v288_v32 = vpack.c.bf16 %v258_v30, %v258_v30  ;;  %v292_v33 = vpack.c.bf16 %v270_v31, %v270_v31 }
  0x9e   : > { %305 = vst.msk [vmem:[%s472_s23 + $0x24] sm:$0xf] %vm295_vm1, %v288_v32  ;;  %v237_v34 = vpop.f32.mrf.mxu0 }
  0x9f   : > { %v249_v35 = vpop.f32.mrf.mxu1  ;;  %309 = vst.msk [vmem:[%s472_s23 + $0x34] sm:$0xf] %vm295_vm1, %v292_v33  ;;  %v281_v36 = vpack.c.bf16 %v237_v34, %v237_v34 }
  0xa0   : > { %v285_v37 = vpack.c.bf16 %v249_v35, %v249_v35 }
  0xa1   : > { %298 = vst.msk [vmem:[%s472_s23 + $0x8] sm:$0xf] %vm295_vm1, %v281_v36 }
  0xa2   : > { %302 = vst.msk [vmem:[%s472_s23 + $0x18] sm:$0xf] %vm295_vm1, %v285_v37 }
  0xa3   : > { %v261_v38 = vpop.f32.mrf.mxu2  ;;  %v273_v39 = vpop.f32.mrf.mxu3 }
  0xa4   : > { %v289_v40 = vpack.c.bf16 %v261_v38, %v261_v38  ;;  %v293_v41 = vpack.c.bf16 %v273_v39, %v273_v39 }
  0xa6   : > { %306 = vst.msk [vmem:[%s472_s23 + $0x28] sm:$0xf] %vm295_vm1, %v289_v40  ;;  %v240_v42 = vpop.f32.mrf.mxu0 }
  0xa7   : > { %v252_v43 = vpop.f32.mrf.mxu1  ;;  %310 = vst.msk [vmem:[%s472_s23 + $0x38] sm:$0xf] %vm295_vm1, %v293_v41  ;;  %v282_v44 = vpack.c.bf16 %v240_v42, %v240_v42 }
  0xa8   : > { %v286_v45 = vpack.c.bf16 %v252_v43, %v252_v43 }
  0xa9   : > { %299 = vst.msk [vmem:[%s472_s23 + $0xc] sm:$0xf] %vm295_vm1, %v282_v44 }
  0xaa   : > { %303 = vst.msk [vmem:[%s472_s23 + $0x1c] sm:$0xf] %vm295_vm1, %v286_v45 }
  0xab   : > { %v264_v46 = vpop.f32.mrf.mxu2  ;;  %v276_v47 = vpop.f32.mrf.mxu3 }
  0xac   : > { %v290_v48 = vpack.c.bf16 %v264_v46, %v264_v46  ;;  %v294_v49 = vpack.c.bf16 %v276_v47, %v276_v47 }
  0xae   : > { %307 = vst.msk [vmem:[%s472_s23 + $0x2c] sm:$0xf] %vm295_vm1, %v290_v48 }
  0xaf   : > { %311 = vst.msk [vmem:[%s472_s23 + $0x3c] sm:$0xf] %vm295_vm1, %v294_v49 }
  0xb0 PF: > { %s12_s9 = sadd.s32 1, %s415_s9  }
  0xb1   : > { %p9_p4 = scmp.ge.s32.totalorder %s12_s9, 4  }
  0xb3   :  { %11 = sbr.rel (!%p9_p4) target bundleno = 1 (0x1), region = 58 }

</bundles_post_ra>
